<compile_context>
chip_gen: v6e
topology: v6e:2x2x1
jax: 0.10.0
libtpu: 0.0.40
codegen_flags: <defaults>
</compile_context>

<pallas_src>
import jax
import jax.numpy as jnp
from jax.experimental import pallas as pl
from jax.experimental.pallas import tpu as pltpu


def autoencoder_kernel(x_ref,
                       w1_ref, b1_ref,
                       w2_ref, b2_ref,
                       w3_ref, b3_ref,
                       w4_ref, b4_ref,
                       o_ref):
    """Whole forward pass (4 matmuls + biases + 3 ReLUs) on one batch tile."""
    x = x_ref[...]                                        # bf16 [tile, D]

    # encoder  (bf16 MXU operands, f32 accumulate, f32 bias/ReLU)
    h = jnp.dot(x, w1_ref[...], preferred_element_type=jnp.float32) + b1_ref[...]
    h = jnp.maximum(h, 0.0).astype(jnp.bfloat16)
    h = jnp.dot(h, w2_ref[...], preferred_element_type=jnp.float32) + b2_ref[...]
    h = jnp.maximum(h, 0.0).astype(jnp.bfloat16)

    # decoder
    h = jnp.dot(h, w3_ref[...], preferred_element_type=jnp.float32) + b3_ref[...]
    h = jnp.maximum(h, 0.0).astype(jnp.bfloat16)
    out = jnp.dot(h, w4_ref[...], preferred_element_type=jnp.float32) + b4_ref[...]

    o_ref[...] = out.astype(o_ref.dtype)                  # lane-dense [tile, Dp]


_MAX_BATCH_TILE = 1024   # rows; keeps double-buffered x/out tiles + [tile,128]
                         # activations comfortably inside v5e's 16 MiB scoped
                         # VMEM (and v7x's 32 MiB default of 64 MiB physical).


def _choose_batch_tile(B):
    """Largest multiple-of-8 divisor of B that is <= _MAX_BATCH_TILE, preferring
    >= 2 grid steps (so v7x can split the batch across its two TensorCores)
    once the batch is large enough to amortize the ~0.35us per-step cost."""
    if B % 8 != 0:
        return B        # single full-batch block (block dim == array dim is legal)
    candidates = [t for t in range(8, min(B, _MAX_BATCH_TILE) + 1, 8)
                  if B % t == 0]
    if not candidates:
        return B
    multi_step = [t for t in candidates if B // t >= 2]
    if multi_step and B >= 64:
        return max(multi_step)
    return max(candidates)


def autoencoder_forward(x, params, *, batch_tile=None):
    """x: [B, D] float32. params: dict of (w, b) per layer in PyTorch layout."""
    B, D = x.shape
    out_dtype = x.dtype

    if batch_tile is None:
        batch_tile = _choose_batch_tile(B)
    assert B % batch_tile == 0, "batch_tile must divide B"
    assert batch_tile % 8 == 0 or batch_tile == B, (
        "batch_tile must be a multiple of 8 (sublane constraint) or equal B")

    # Lane-dense padded output width (multiple of 128).
    Dp = pl.cdiv(D, 128) * 128

    # bf16 MXU operands; biases kept f32 (added to the f32 accumulator).
    xb = x.astype(jnp.bfloat16)
    w1 = params["w1"].T.astype(jnp.bfloat16)
    b1 = params["b1"][None, :].astype(jnp.float32)
    w2 = params["w2"].T.astype(jnp.bfloat16)
    b2 = params["b2"][None, :].astype(jnp.float32)
    w3 = params["w3"].T.astype(jnp.bfloat16)
    b3 = params["b3"][None, :].astype(jnp.float32)
    # Last layer padded D -> Dp with zeros so the output store is full-lane.
    w4 = jnp.pad(params["w4"].T, ((0, 0), (0, Dp - D))).astype(jnp.bfloat16)
    b4 = jnp.pad(params["b4"], (0, Dp - D))[None, :].astype(jnp.float32)

    def const_spec(arr):
        # Weights / biases: same full block at every grid step (Pallas keeps
        # the block resident; it is tiny, ~80 KiB total).
        return pl.BlockSpec(arr.shape, lambda i: (0, 0))

    grid = (B // batch_tile,)

    flops = 2 * B * (D * 128 + 128 * 64 + 64 * 128 + 128 * D)
    weight_bytes = sum(int(a.size) * a.dtype.itemsize
                       for a in (w1, b1, w2, b2, w3, b3, w4, b4))
    bytes_accessed = int(xb.size) * 2 + B * Dp * 4 + weight_bytes

    out_padded = pl.pallas_call(
        autoencoder_kernel,
        out_shape=jax.ShapeDtypeStruct((B, Dp), out_dtype),
        grid_spec=pltpu.PrefetchScalarGridSpec(
            num_scalar_prefetch=0,
            grid=grid,
            in_specs=[
                pl.BlockSpec((batch_tile, D), lambda i: (i, 0)),   # x tile
                const_spec(w1), const_spec(b1),
                const_spec(w2), const_spec(b2),
                const_spec(w3), const_spec(b3),
                const_spec(w4), const_spec(b4),
            ],
            out_specs=pl.BlockSpec((batch_tile, Dp), lambda i: (i, 0)),
        ),
        compiler_params=pltpu.CompilerParams(
            dimension_semantics=("parallel",)),
        cost_estimate=pl.CostEstimate(
            flops=flops, transcendentals=0, bytes_accessed=bytes_accessed),
    )(xb, w1, b1, w2, b2, w3, b3, w4, b4)

    return out_padded[:, :D]


def init_params(key, input_dim):
    """Deterministic init matching nn.Linear shapes (weight [out, in], bias [out])."""
    dims = [(128, input_dim), (64, 128), (128, 64), (input_dim, 128)]
    params = {}
    for idx, (out_d, in_d) in enumerate(dims, start=1):
        key, kw, kb = jax.random.split(key, 3)
        bound = 1.0 / jnp.sqrt(in_d)
        params[f"w{idx}"] = jax.random.uniform(
            kw, (out_d, in_d), jnp.float32, -bound, bound)
        params[f"b{idx}"] = jax.random.uniform(
            kb, (out_d,), jnp.float32, -bound, bound)
    return params


def reference_forward(x, p):
    """Pure-JAX f32 reference of the PyTorch forward, for verification."""
    h = jnp.maximum(x @ p["w1"].T + p["b1"], 0.0)
    h = jnp.maximum(h @ p["w2"].T + p["b2"], 0.0)
    h = jnp.maximum(h @ p["w3"].T + p["b3"], 0.0)
    return h @ p["w4"].T + p["b4"]


if __name__ == "__main__":
    key = jax.random.PRNGKey(0)
    input_dim = 32     # number of stat columns after dropping id columns
    batch = 8          # small batch of normalized rows

    k_x, k_p = jax.random.split(key)
    x = jax.random.normal(k_x, (batch, input_dim), jnp.float32)
    params = init_params(k_p, input_dim)

    out = autoencoder_forward(x, params)
    out = jax.block_until_ready(out)

    ref = reference_forward(x, params)
    assert out.shape == (batch, input_dim)
    # bf16 MXU operands with f32 accumulation: compare with a loose tolerance.
    assert jnp.allclose(out, ref, atol=5e-2, rtol=5e-2)

    print("KERNEL_OK")
</pallas_src>

<mosaic_0001>
module attributes {stable_mosaic.version = 11 : i64} {
  func.func @autoencoder_kernel(%arg0: i32, %arg1: memref<8x32xbf16, #tpu.memory_space<vmem>>, %arg2: memref<32x128xbf16, #tpu.memory_space<vmem>>, %arg3: memref<1x128xf32, #tpu.memory_space<vmem>>, %arg4: memref<128x64xbf16, #tpu.memory_space<vmem>>, %arg5: memref<1x64xf32, #tpu.memory_space<vmem>>, %arg6: memref<64x128xbf16, #tpu.memory_space<vmem>>, %arg7: memref<1x128xf32, #tpu.memory_space<vmem>>, %arg8: memref<128x128xbf16, #tpu.memory_space<vmem>>, %arg9: memref<1x128xf32, #tpu.memory_space<vmem>>, %arg10: memref<8x128xf32, #tpu.memory_space<vmem>>) attributes {dimension_semantics = [#tpu.dimension_semantics<parallel>], iteration_bounds = array<i64: 1>, scalar_prefetch = 0 : i64, scratch_operands = 0 : i64, tpu.core_type = #tpu.core_type<tc>, window_params = [{transform_indices = @transform_0, window_bounds = array<i64: 8, 32>}, {pipeline_mode = #tpu.pipeline_mode<synchronous>, transform_indices = @transform_1, window_bounds = array<i64: 32, 128>}, {pipeline_mode = #tpu.pipeline_mode<synchronous>, transform_indices = @transform_2, window_bounds = array<i64: 1, 128>}, {pipeline_mode = #tpu.pipeline_mode<synchronous>, transform_indices = @transform_3, window_bounds = array<i64: 128, 64>}, {pipeline_mode = #tpu.pipeline_mode<synchronous>, transform_indices = @transform_4, window_bounds = array<i64: 1, 64>}, {pipeline_mode = #tpu.pipeline_mode<synchronous>, transform_indices = @transform_5, window_bounds = array<i64: 64, 128>}, {pipeline_mode = #tpu.pipeline_mode<synchronous>, transform_indices = @transform_6, window_bounds = array<i64: 1, 128>}, {pipeline_mode = #tpu.pipeline_mode<synchronous>, transform_indices = @transform_7, window_bounds = array<i64: 128, 128>}, {pipeline_mode = #tpu.pipeline_mode<synchronous>, transform_indices = @transform_8, window_bounds = array<i64: 1, 128>}, {transform_indices = @transform_9, window_bounds = array<i64: 8, 128>}]} {
    %c0 = arith.constant 0 : index
    %c0_0 = arith.constant 0 : index
    %0 = vector.load %arg1[%c0, %c0_0] : memref<8x32xbf16, #tpu.memory_space<vmem>>, vector<8x32xbf16>
    %c0_1 = arith.constant 0 : index
    %c0_2 = arith.constant 0 : index
    %1 = vector.load %arg2[%c0_1, %c0_2] : memref<32x128xbf16, #tpu.memory_space<vmem>>, vector<32x128xbf16>
    %cst = arith.constant dense<0.000000e+00> : vector<8x128xf32>
    %2 = tpu.matmul %0, %1, %cst {dimension_numbers = #tpu.dot_dimension_numbers<[1], [0], [0], [1], [0, 0, 1, 1], [], []>} : vector<8x32xbf16>, vector<32x128xbf16>, vector<8x128xf32> -> vector<8x128xf32>
    %c0_3 = arith.constant 0 : index
    %c0_4 = arith.constant 0 : index
    %3 = vector.load %arg3[%c0_3, %c0_4] : memref<1x128xf32, #tpu.memory_space<vmem>>, vector<1x128xf32>
    %4 = vector.broadcast %3 : vector<1x128xf32> to vector<8x128xf32>
    %5 = arith.addf %2, %4 : vector<8x128xf32>
    %cst_5 = arith.constant 0.000000e+00 : f32
    %6 = vector.broadcast %cst_5 : f32 to vector<8x128xf32>
    %7 = arith.maximumf %5, %6 : vector<8x128xf32>
    %8 = arith.truncf %7 : vector<8x128xf32> to vector<8x128xbf16>
    %c0_6 = arith.constant 0 : index
    %c0_7 = arith.constant 0 : index
    %9 = vector.load %arg4[%c0_6, %c0_7] : memref<128x64xbf16, #tpu.memory_space<vmem>>, vector<128x64xbf16>
    %cst_8 = arith.constant dense<0.000000e+00> : vector<8x64xf32>
    %10 = tpu.matmul %8, %9, %cst_8 {dimension_numbers = #tpu.dot_dimension_numbers<[1], [0], [0], [1], [0, 0, 1, 1], [], []>} : vector<8x128xbf16>, vector<128x64xbf16>, vector<8x64xf32> -> vector<8x64xf32>
    %c0_9 = arith.constant 0 : index
    %c0_10 = arith.constant 0 : index
    %11 = vector.load %arg5[%c0_9, %c0_10] : memref<1x64xf32, #tpu.memory_space<vmem>>, vector<1x64xf32>
    %12 = vector.broadcast %11 : vector<1x64xf32> to vector<8x64xf32>
    %13 = arith.addf %10, %12 : vector<8x64xf32>
    %cst_11 = arith.constant 0.000000e+00 : f32
    %14 = vector.broadcast %cst_11 : f32 to vector<8x64xf32>
    %15 = arith.maximumf %13, %14 : vector<8x64xf32>
    %16 = arith.truncf %15 : vector<8x64xf32> to vector<8x64xbf16>
    %c0_12 = arith.constant 0 : index
    %c0_13 = arith.constant 0 : index
    %17 = vector.load %arg6[%c0_12, %c0_13] : memref<64x128xbf16, #tpu.memory_space<vmem>>, vector<64x128xbf16>
    %cst_14 = arith.constant dense<0.000000e+00> : vector<8x128xf32>
    %18 = tpu.matmul %16, %17, %cst_14 {dimension_numbers = #tpu.dot_dimension_numbers<[1], [0], [0], [1], [0, 0, 1, 1], [], []>} : vector<8x64xbf16>, vector<64x128xbf16>, vector<8x128xf32> -> vector<8x128xf32>
    %c0_15 = arith.constant 0 : index
    %c0_16 = arith.constant 0 : index
    %19 = vector.load %arg7[%c0_15, %c0_16] : memref<1x128xf32, #tpu.memory_space<vmem>>, vector<1x128xf32>
    %20 = vector.broadcast %19 : vector<1x128xf32> to vector<8x128xf32>
    %21 = arith.addf %18, %20 : vector<8x128xf32>
    %cst_17 = arith.constant 0.000000e+00 : f32
    %22 = vector.broadcast %cst_17 : f32 to vector<8x128xf32>
    %23 = arith.maximumf %21, %22 : vector<8x128xf32>
    %24 = arith.truncf %23 : vector<8x128xf32> to vector<8x128xbf16>
    %c0_18 = arith.constant 0 : index
    %c0_19 = arith.constant 0 : index
    %25 = vector.load %arg8[%c0_18, %c0_19] : memref<128x128xbf16, #tpu.memory_space<vmem>>, vector<128x128xbf16>
    %cst_20 = arith.constant dense<0.000000e+00> : vector<8x128xf32>
    %26 = tpu.matmul %24, %25, %cst_20 {dimension_numbers = #tpu.dot_dimension_numbers<[1], [0], [0], [1], [0, 0, 1, 1], [], []>} : vector<8x128xbf16>, vector<128x128xbf16>, vector<8x128xf32> -> vector<8x128xf32>
    %c0_21 = arith.constant 0 : index
    %c0_22 = arith.constant 0 : index
    %27 = vector.load %arg9[%c0_21, %c0_22] : memref<1x128xf32, #tpu.memory_space<vmem>>, vector<1x128xf32>
    %28 = vector.broadcast %27 : vector<1x128xf32> to vector<8x128xf32>
    %29 = arith.addf %26, %28 : vector<8x128xf32>
    %c0_23 = arith.constant 0 : index
    %c0_24 = arith.constant 0 : index
    %30 = vector.load %arg10[%c0_23, %c0_24] : memref<8x128xf32, #tpu.memory_space<vmem>>, vector<8x128xf32>
    tpu.vector_store %arg10[%c0_23, %c0_24], %29 {strides = array<i32>} : memref<8x128xf32, #tpu.memory_space<vmem>>, vector<8x128xf32>,
    return
  }
  func.func @transform_0(%arg0: i32) -> (i32, i32) {
    %c0_i32 = arith.constant 0 : i32
    %c0_i32_0 = arith.constant 0 : i32
    return %arg0, %c0_i32 : i32, i32
  }
  func.func @transform_1(%arg0: i32) -> (i32, i32) {
    %c0_i32 = arith.constant 0 : i32
    %c0_i32_0 = arith.constant 0 : i32
    %c0_i32_1 = arith.constant 0 : i32
    return %c0_i32, %c0_i32_0 : i32, i32
  }
  func.func @transform_2(%arg0: i32) -> (i32, i32) {
    %c0_i32 = arith.constant 0 : i32
    %c0_i32_0 = arith.constant 0 : i32
    %c0_i32_1 = arith.constant 0 : i32
    return %c0_i32, %c0_i32_0 : i32, i32
  }
  func.func @transform_3(%arg0: i32) -> (i32, i32) {
    %c0_i32 = arith.constant 0 : i32
    %c0_i32_0 = arith.constant 0 : i32
    %c0_i32_1 = arith.constant 0 : i32
    return %c0_i32, %c0_i32_0 : i32, i32
  }
  func.func @transform_4(%arg0: i32) -> (i32, i32) {
    %c0_i32 = arith.constant 0 : i32
    %c0_i32_0 = arith.constant 0 : i32
    %c0_i32_1 = arith.constant 0 : i32
    return %c0_i32, %c0_i32_0 : i32, i32
  }
  func.func @transform_5(%arg0: i32) -> (i32, i32) {
    %c0_i32 = arith.constant 0 : i32
    %c0_i32_0 = arith.constant 0 : i32
    %c0_i32_1 = arith.constant 0 : i32
    return %c0_i32, %c0_i32_0 : i32, i32
  }
  func.func @transform_6(%arg0: i32) -> (i32, i32) {
    %c0_i32 = arith.constant 0 : i32
    %c0_i32_0 = arith.constant 0 : i32
    %c0_i32_1 = arith.constant 0 : i32
    return %c0_i32, %c0_i32_0 : i32, i32
  }
  func.func @transform_7(%arg0: i32) -> (i32, i32) {
    %c0_i32 = arith.constant 0 : i32
    %c0_i32_0 = arith.constant 0 : i32
    %c0_i32_1 = arith.constant 0 : i32
    return %c0_i32, %c0_i32_0 : i32, i32
  }
  func.func @transform_8(%arg0: i32) -> (i32, i32) {
    %c0_i32 = arith.constant 0 : i32
    %c0_i32_0 = arith.constant 0 : i32
    %c0_i32_1 = arith.constant 0 : i32
    return %c0_i32, %c0_i32_0 : i32, i32
  }
  func.func @transform_9(%arg0: i32) -> (i32, i32) {
    %c0_i32 = arith.constant 0 : i32
    %c0_i32_0 = arith.constant 0 : i32
    return %arg0, %c0_i32 : i32, i32
  }
}

</mosaic_0001>

<bundles_post_ra>
// kernel: tpu_custom_call.1
= control target key start
LH: loop header
LB: loop body
LE: loop exit
PB: predicated region body
PF: predicated region fallthrough
CT: control target
= control target key end

     0   :  { %14 = vsyncpa [#allocation3], 0  ;;  %s796_s0 = inlined_call_operand.vmem [shape: bf16[8,32], index: 0, kind: input, shape index: {}]   ;;  %s797_s1 = inlined_call_operand.hbm [shape: bf16[32,128], index: 1, kind: input, shape index: {}]   ;;  %s798_s2 = inlined_call_operand.vmem [shape: f32[1,128], index: 2, kind: input, shape index: {}]   ;;  %s799_s3 = inlined_call_operand.vmem [shape: bf16[128,64], index: 3, kind: input, shape index: {}]   ;;  %s800_s4 = inlined_call_operand.vmem [shape: f32[1,64], index: 4, kind: input, shape index: {}]   ;;  %s801_s5 = inlined_call_operand.vmem [shape: bf16[64,128], index: 5, kind: input, shape index: {}]   ;;  %s802_s6 = inlined_call_operand.vmem [shape: f32[1,128], index: 6, kind: input, shape index: {}]   ;;  %s803_s7 = inlined_call_operand.vmem [shape: bf16[128,128], index: 7, kind: input, shape index: {}]   ;;  %s804_s8 = inlined_call_operand.vmem [shape: f32[1,128], index: 8, kind: input, shape index: {}]   ;;  %s805_s9 = inlined_call_operand.hbm [shape: f32[8,128], index: 9, kind: output, shape index: {}]  }
   0x1   :  { %15 = vsyncpa [#allocation4], 0  ;;  %s629_s30 = smov [#allocation2]  }
   0x2   :  { %s23_s10 = sshll.u32 %s629_s30, 4  ;;  %s24_s10 = int_to_ptr.vmem [resolvable:$true] %s23_s10 }
   0x3   :  { %s593_s11 = scalar_lea.vmem %s24_s10, 256  ;;  %p598_p1 = scmp.lt.s32.totalorder %s24_s10, %s24_s10 }
   0x4   :  { %p594_p0 = scmp.ne.s32.totalorder %s24_s10, %s593_s11  ;;  %p599_p2 = scmp.lt.s32.totalorder %s593_s11, %s593_s11 }
   0x6   :  { %p600_p3 = por %p599_p2, %p598_p1 }
   0x8   :  { %p601_p4 = pnand %p600_p3, %p594_p0 }
   0xa   :  { %604 = shalt.err (!%p601_p4)
}
   0xb   :  { %s630_s12 = smov 64   ;;  %s631_s13 = smov 4  }
   0xc   :  { %29 = dma.hbm_to_vmem [thread:$0]  %s797_s1, 256, %s24_s10, [#allocation3], %s630_s12, %s630_s12, %s631_s13  }
   0xd   :  { %625 = dma.done.wait [#allocation3], 256  }
   0xe   :  { %626 = vsyncadd [#allocation3], 4294967040  ;;  %v632_v0 = vmov 0.0   ;;  %vm633_vm0 = vmmov 0   ;;  %v563_v1 = vld [vmem:[#allocation2 + $0x8] sm:$0xff]   ;;  %v564_v2 = vld [vmem:[#allocation2] sm:$0xff]  }
   0xf   :  { %497 = vmatprep.subr.bf16.mxu1 %v632_v0  ;;  %501 = vmatprep.mubr.msk.bf16.mxu1 %vm633_vm0, %v632_v0  ;;  %v48_v3 = vld [vmem:[%s796_s0] sm:$0xf]  ;;  %vm72_vm1 = vcmask 261120   ;;  %v565_v4 = vld [vmem:[%s799_s3 + $0x38] sm:$0xff]   ;;  %v566_v5 = vld [vmem:[%s799_s3 + $0x30] sm:$0xff]   ;;  %vm270_vm2 = vcmask 523264  }
  0x10   :  { %525 = vmatprep.subr.bf16.mxu0 %v632_v0  ;;  %533 = vmatprep.mubr.msk.bf16.mxu0 %vm633_vm0, %v632_v0  ;;  %v567_v6 = vld [vmem:[%s799_s3 + $0x28] sm:$0xff]   ;;  %v568_v7 = vld [vmem:[%s799_s3 + $0x20] sm:$0xff]   ;;  %v569_v8 = vld [vmem:[%s799_s3 + $0x18] sm:$0xff]   ;;  %s634_s1 = smov [#allocation5]  }
  0x11   :  { %498 = vmatpush3.bf16.msra.mxu1 %v563_v1  ;;  %v570_v9 = vld [vmem:[%s799_s3 + $0x10] sm:$0xff]   ;;  %v571_v10 = vld [vmem:[%s799_s3 + $0x8] sm:$0xff]   ;;  %v572_v11 = vld [vmem:[%s799_s3] sm:$0xff]   ;;  %s434_s3 = sshll.u32 %s634_s1, 4  ;;  %s435_s3 = int_to_ptr.vmem [resolvable:$true] %s434_s3 }
  0x12   :  { %499 = vmatprep.subr.bf16.mxu1 %v632_v0  ;;  %v573_v12 = vld [vmem:[%s801_s5 + $0x18] sm:$0xff]   ;;  %v574_v13 = vld [vmem:[%s801_s5 + $0x10] sm:$0xff]   ;;  %v443_v14 = vld [vmem:[%s798_s2] ss:$0 sm:$0xff]  ;;  %p610_p6 = scmp.lt.s32.totalorder %s435_s3, %s435_s3 }
  0x13   :  { %526 = vmatpush3.bf16.msra.mxu0 %v573_v12  ;;  %v575_v22 = vld [vmem:[%s801_s5 + $0x8] sm:$0xff]   ;;  %v576_v23 = vld [vmem:[%s801_s5] sm:$0xff]   ;;  %v577_v30 = vld [vmem:[%s803_s7 + $0x38] sm:$0xff]  }
  0x14   :  { %527 = vmatprep.subr.bf16.mxu0 %v632_v0  ;;  %v447_v24 = vld [vmem:[%s800_s4] ss:$0 sm:$0xff]  ;;  %v578_v33 = vld [vmem:[%s803_s7 + $0x30] sm:$0xff]   ;;  %v579_v34 = vld [vmem:[%s803_s7 + $0x28] sm:$0xff]  }
  0x15   :  { %500 = vmatpush3.bf16.msra.mxu1 %v564_v2  ;;  %v580_v35 = vld [vmem:[%s803_s7 + $0x20] sm:$0xff]   ;;  %v581_v36 = vld [vmem:[%s803_s7 + $0x18] sm:$0xff]   ;;  %v582_v37 = vld [vmem:[%s803_s7 + $0x10] sm:$0xff]  }
  0x16   :  { %505 = vmatprep.subr.bf16.mxu1 %v632_v0  ;;  %v583_v38 = vld [vmem:[%s803_s7 + $0x8] sm:$0xff]   ;;  %v584_v39 = vld [vmem:[%s803_s7] sm:$0xff]  }
  0x17   :  { %528 = vmatpush3.bf16.msra.mxu0 %v574_v13  ;;  %v456_v40 = vld [vmem:[%s802_s6] ss:$0 sm:$0xff]  ;;  %s605_s6 = scalar_lea.vmem %s435_s3, 128 }
  0x18   :  { %502 = vmatmul.mubr.msk.bf16.vlgmr.msra.gmra.mxu1 %vm72_vm1, %v48_v3  ;;  %529 = vmatprep.subr.bf16.mxu0 %v632_v0  ;;  %v462_v48 = vld [vmem:[%s804_s8] ss:$0 sm:$0xff]  ;;  %p606_p5 = scmp.ne.s32.totalorder %s435_s3, %s605_s6  ;;  %p611_p7 = scmp.lt.s32.totalorder %s605_s6, %s605_s6 }
  0x19   :  { %506 = vmatpush3.bf16.msra.mxu1 %v565_v4  ;;  %521 = vmatprep.mubr.msk.bf16.mxu1 %vm633_vm0, %v632_v0 }
  0x1a   :  { %507 = vmatprep.subr.bf16.mxu1 %v632_v0  ;;  %p612_p8 = por %p611_p7, %p610_p6 }
  0x1b   :  { %530 = vmatpush3.bf16.msra.mxu0 %v575_v22 }
  0x1c   :  { %531 = vmatprep.subr.bf16.mxu0 %v632_v0  ;;  %p613_p9 = pnand %p612_p8, %p606_p5 }
  0x1d   :  { %508 = vmatpush3.bf16.msra.mxu1 %v566_v5 }
  0x1e   :  { %509 = vmatprep.subr.bf16.mxu1 %v632_v0 }
  0x1f   :  { %532 = vmatpush3.bf16.msra.mxu0 %v576_v23 }
  0x20   :  { %537 = vmatprep.subr.bf16.mxu0 %v632_v0 }
  0x21   :  { %510 = vmatpush3.bf16.msra.mxu1 %v567_v6 }
  0x22   :  { %511 = vmatprep.subr.bf16.mxu1 %v632_v0 }
  0x25   :  { %512 = vmatpush3.bf16.msra.mxu1 %v568_v7 }
  0x26   :  { %513 = vmatprep.subr.bf16.mxu1 %v632_v0 }
  0x29   :  { %514 = vmatpush3.bf16.msra.mxu1 %v569_v8 }
  0x2a   :  { %515 = vmatprep.subr.bf16.mxu1 %v632_v0 }
  0x2d   :  { %516 = vmatpush3.bf16.msra.mxu1 %v570_v9 }
  0x2e   :  { %517 = vmatprep.subr.bf16.mxu1 %v632_v0 }
  0x31   :  { %518 = vmatpush3.bf16.msra.mxu1 %v571_v10 }
  0x32   :  { %519 = vmatprep.subr.bf16.mxu1 %v632_v0 }
  0x35   :  { %520 = vmatpush3.bf16.msra.mxu1 %v572_v11 }
  0xd8   :  { %v110_v15 = vpop.f32.mrf.mxu1 }
  0xd9   :  { %v111_v16 = vadd.f32 %v443_v14, %v110_v15 }
  0xda   :  { %v503_v17 = vpop.f32.mrf.mxu1 }
  0xdb   :  { %v116_v18 = vmax.f32 %v111_v16, 0.0 }
  0xdc   :  { %v113_v19 = vpop.f32.mrf.mxu1 }
  0xdd   :  { %v117_v20 = vpack.c.bf16 %v116_v18, %v116_v18 }
  0xde   :  { %v504_v21 = vpop.f32.mrf.mxu1 }
  0xdf   :  { %522 = vmatmul.mubr.bf16.vlgmr.msra.gmra.mxu1 %v117_v20 }
 0x19f   :  { %v223_v25 = vpop.f32.mrf.mxu1 }
 0x1a0   :  { %v224_v26 = vadd.f32 %v447_v24, %v223_v25 }
 0x1a1   :  { %v523_v27 = vpop.f32.mrf.mxu1 }
 0x1a2   :  { %v229_v28 = vmax.f32 %v224_v26, 0.0 }
 0x1a3   :  { %v226_v29 = vpop.f32.mrf.mxu1 }
 0x1a4   :  { %v230_v31 = vpack.c.bf16 %v229_v28, %v229_v28 }
 0x1a5   :  { %v524_v32 = vpop.f32.mrf.mxu1 }
 0x1a6   :  { %534 = vmatmul.mubr.msk.bf16.vlgmr.msra.gmra.mxu0 %vm270_vm2, %v230_v31 }
 0x1a7   :  { %538 = vmatpush3.bf16.msra.mxu0 %v577_v30  ;;  %553 = vmatprep.mubr.msk.bf16.mxu0 %vm633_vm0, %v632_v0 }
 0x1a8   :  { %539 = vmatprep.subr.bf16.mxu0 %v632_v0 }
 0x1ab   :  { %540 = vmatpush3.bf16.msra.mxu0 %v578_v33 }
 0x1ac   :  { %541 = vmatprep.subr.bf16.mxu0 %v632_v0 }
 0x1af   :  { %542 = vmatpush3.bf16.msra.mxu0 %v579_v34 }
 0x1b0   :  { %543 = vmatprep.subr.bf16.mxu0 %v632_v0 }
 0x1b3   :  { %544 = vmatpush3.bf16.msra.mxu0 %v580_v35 }
 0x1b4   :  { %545 = vmatprep.subr.bf16.mxu0 %v632_v0 }
 0x1b7   :  { %546 = vmatpush3.bf16.msra.mxu0 %v581_v36 }
 0x1b8   :  { %547 = vmatprep.subr.bf16.mxu0 %v632_v0 }
 0x1bb   :  { %548 = vmatpush3.bf16.msra.mxu0 %v582_v37 }
 0x1bc   :  { %549 = vmatprep.subr.bf16.mxu0 %v632_v0 }
 0x1bf   :  { %550 = vmatpush3.bf16.msra.mxu0 %v583_v38 }
 0x1c0   :  { %551 = vmatprep.subr.bf16.mxu0 %v632_v0 }
 0x1c3   :  { %552 = vmatpush3.bf16.msra.mxu0 %v584_v39 }
 0x266   :  { %v308_v41 = vpop.f32.mrf.mxu0 }
 0x267   :  { %v309_v42 = vadd.f32 %v456_v40, %v308_v41 }
 0x268   :  { %v535_v43 = vpop.f32.mrf.mxu0 }
 0x269   :  { %v314_v44 = vmax.f32 %v309_v42, 0.0 }
 0x26a   :  { %v311_v45 = vpop.f32.mrf.mxu0 }
 0x26b   :  { %v315_v46 = vpack.c.bf16 %v314_v44, %v314_v44 }
 0x26c   :  { %v536_v47 = vpop.f32.mrf.mxu0 }
 0x26d   :  { %554 = vmatmul.mubr.bf16.vlgmr.msra.gmra.mxu0 %v315_v46 }
 0x32d   :  { %v421_v49 = vpop.f32.mrf.mxu0 }
 0x32e   :  { %v422_v50 = vadd.f32 %v462_v48, %v421_v49 }
 0x32f   :  { %v555_v51 = vpop.f32.mrf.mxu0 }
 0x330   :  { %427 = vst [vmem:[#allocation5] sm:$0xff] %v422_v50 }
 0x331   :  { %v424_v52 = vpop.f32.mrf.mxu0 }
 0x332   :  { %616 = shalt.err (!%p613_p9)
}
 0x333   :  { %437 = dma.vmem_to_hbm [thread:$0]  %s435_s3, 128, %s805_s9, [#allocation4]   ;;  %v556_v53 = vpop.f32.mrf.mxu0 }
 0x334   :  { %627 = dma.done.wait [#allocation4], 128  }
 0x335   :  { %628 = vsyncadd [#allocation4], 4294967168 }
 0x336   :  { %441 = vsyncpa [#allocation3], 1 }
 0x337   :  { %442 = vsyncpa [#allocation4], 1 }

</bundles_post_ra>
